<compile_context>
chip_gen: v7x
topology: tpu7x:2x2x1
jax: 0.10.0
libtpu: 0.0.40
codegen_flags: <defaults>
</compile_context>

<pallas_src>
import jax
import jax.numpy as jnp
from jax.experimental import pallas as pl
from jax.experimental.pallas import tpu as pltpu

LANE = 128
SUBLANE = 8
_NEG_FILL = -1e30  # padded-class logit fill: exp(-1e30 - m) == 0.0 in f32


def _round_up(n, m):
    return ((n + m - 1) // m) * m


def _mlp_kernel(x_ref,
                w1_ref, b1_ref,
                w2_ref, b2_ref,
                w3_ref, b3_ref,
                w4_ref, b4_ref,
                o_ref):
    """Whole-MLP forward for one batch tile; weights are VMEM-resident."""
    x = x_ref[...]

    # fc1 + ReLU   (dropout1 == identity in eval mode)
    h = jnp.dot(x.astype(jnp.bfloat16), w1_ref[...],
                preferred_element_type=jnp.float32) + b1_ref[...]
    h = jnp.maximum(h, 0.0)

    # fc2 + ReLU   (dropout2 == identity in eval mode)
    h = jnp.dot(h.astype(jnp.bfloat16), w2_ref[...],
                preferred_element_type=jnp.float32) + b2_ref[...]
    h = jnp.maximum(h, 0.0)

    # fc3 + ReLU
    h = jnp.dot(h.astype(jnp.bfloat16), w3_ref[...],
                preferred_element_type=jnp.float32) + b3_ref[...]
    h = jnp.maximum(h, 0.0)

    # fc4 + softmax over the class axis (padded class lanes carry -1e30 bias
    # and zero weights, so they contribute exp() == 0 and softmax to 0).
    logits = jnp.dot(h.astype(jnp.bfloat16), w4_ref[...],
                     preferred_element_type=jnp.float32) + b4_ref[...]
    m = jnp.max(logits, axis=1, keepdims=True)
    e = jnp.exp(logits - m)
    denom = jnp.sum(e, axis=1, keepdims=True)
    # Exact division so each row sums to 1 up to f32 rounding.
    o_ref[...] = e / denom


def prepare_params(params):
    """Pad feature dims to 128 lanes; weights -> bf16, biases stay f32."""
    prepped = {}
    for i in range(1, 5):
        w = params[f"w{i}"]
        b = params[f"b{i}"].reshape(1, -1)
        fi, fo = w.shape
        fi_p, fo_p = _round_up(fi, LANE), _round_up(fo, LANE)
        wp = jnp.zeros((fi_p, fo_p), jnp.float32).at[:fi, :fo].set(w)
        prepped[f"w{i}"] = wp.astype(jnp.bfloat16)
        fill = _NEG_FILL if i == 4 else 0.0
        bp = jnp.full((1, fo_p), fill, jnp.float32).at[:, :fo].set(b)
        prepped[f"b{i}"] = bp
    return prepped


def net_forward(x, prepped, n_class, *, tb=256):
    """x: [B, D_in] f32; prepped: output of prepare_params; returns [B, n_class]."""
    B, d_in = x.shape
    d_in_p = prepped["w1"].shape[0]
    c_p = prepped["w4"].shape[1]

    # Batch tile: multiple of 8 sublanes; small enough for v7x's 32 MiB scoped
    # VMEM (TB=256 lane-dense f32 activations + ~128 KiB resident weights).
    TB = min(tb, _round_up(B, SUBLANE))
    TB = _round_up(TB, SUBLANE)
    B_p = _round_up(B, TB)

    x_p = jnp.zeros((B_p, d_in_p), jnp.float32).at[:B, :d_in].set(x)

    args = (x_p,
            prepped["w1"], prepped["b1"],
            prepped["w2"], prepped["b2"],
            prepped["w3"], prepped["b3"],
            prepped["w4"], prepped["b4"])

    def resident(a):
        # Whole array as one block, same block for every grid step -> stays in VMEM.
        return pl.BlockSpec(a.shape, lambda i: (0, 0))

    in_specs = [pl.BlockSpec((TB, d_in_p), lambda i: (i, 0))]
    in_specs += [resident(a) for a in args[1:]]

    flops = 2 * B_p * sum(prepped[f"w{k}"].shape[0] * prepped[f"w{k}"].shape[1]
                          for k in range(1, 5))
    bytes_accessed = (x_p.size * 4
                      + sum(int(a.size) * a.dtype.itemsize for a in args[1:])
                      + B_p * c_p * 4)

    out = pl.pallas_call(
        _mlp_kernel,
        out_shape=jax.ShapeDtypeStruct((B_p, c_p), jnp.float32),
        grid=(B_p // TB,),
        in_specs=in_specs,
        out_specs=pl.BlockSpec((TB, c_p), lambda i: (i, 0)),
        compiler_params=pltpu.CompilerParams(
            dimension_semantics=("parallel",)),
        cost_estimate=pl.CostEstimate(
            flops=flops,
            transcendentals=B_p * c_p,
            bytes_accessed=bytes_accessed),
    )(*args)

    return out[:B, :n_class]


def init_params(key, input_shape, neurons1, neurons2, neurons3, n_class):
    """Deterministic init mimicking nn.Linear default: U(-1/sqrt(fan_in), +)."""
    dims = [(input_shape, neurons1),
            (neurons1, neurons2),
            (neurons2, neurons3),
            (neurons3, n_class)]
    params = {}
    for i, (fan_in, fan_out) in enumerate(dims, start=1):
        key, kw, kb = jax.random.split(key, 3)
        bound = 1.0 / jnp.sqrt(float(fan_in))
        params[f"w{i}"] = jax.random.uniform(
            kw, (fan_in, fan_out), jnp.float32, -bound, bound)
        params[f"b{i}"] = jax.random.uniform(
            kb, (1, fan_out), jnp.float32, -bound, bound)
    return params


def _reference_bf16(x, params):
    """Pure-JAX reference with the same bf16-operand / f32-accumulate dots."""
    h = x
    for i in range(1, 4):
        h = jnp.maximum(
            jnp.dot(h.astype(jnp.bfloat16), params[f"w{i}"].astype(jnp.bfloat16),
                    preferred_element_type=jnp.float32) + params[f"b{i}"], 0.0)
    logits = jnp.dot(h.astype(jnp.bfloat16), params["w4"].astype(jnp.bfloat16),
                     preferred_element_type=jnp.float32) + params["b4"]
    return jax.nn.softmax(logits, axis=1)


def _reference_f32(x, params):
    h = jnp.maximum(x @ params["w1"] + params["b1"], 0.0)
    h = jnp.maximum(h @ params["w2"] + params["b2"], 0.0)
    h = jnp.maximum(h @ params["w3"] + params["b3"], 0.0)
    return jax.nn.softmax(h @ params["w4"] + params["b4"], axis=1)


if __name__ == "__main__":
    # Small, module-consistent shapes.
    batch = 16
    input_shape = 32
    hp = {"neurons1": 64, "neurons2": 64, "neurons3": 32}
    n_class = 8  # stands in for global_config.n_class

    key = jax.random.PRNGKey(0)
    key, kx = jax.random.split(key)
    x = jax.random.normal(kx, (batch, input_shape), jnp.float32)

    params = init_params(key, input_shape,
                         hp["neurons1"], hp["neurons2"], hp["neurons3"], n_class)
    prepped = prepare_params(params)

    # tb=8 so the demo exercises a multi-step batch grid (grid=(2,)).
    out = net_forward(x, prepped, n_class, tb=8)
    out = jax.block_until_ready(out)
    assert out.shape == (batch, n_class)

    # Check against a reference doing identical bf16 dots.
    ref_bf16 = _reference_bf16(x, params)
    assert jnp.allclose(out, ref_bf16, atol=2e-3, rtol=2e-3), (
        jnp.max(jnp.abs(out - ref_bf16)))
    # Sanity against full-f32 reference (bf16 weight rounding tolerance).
    ref_f32 = _reference_f32(x, params)
    assert jnp.allclose(out, ref_f32, atol=5e-2), jnp.max(jnp.abs(out - ref_f32))
    # Rows sum to 1 (exact-division softmax; padded class lanes contribute 0).
    assert jnp.allclose(jnp.sum(out, axis=1), 1.0, atol=2e-3), (
        jnp.max(jnp.abs(jnp.sum(out, axis=1) - 1.0)))

    print("KERNEL_OK")
</pallas_src>

<mosaic_0001>
module attributes {stable_mosaic.version = 11 : i64} {
  func.func @_mlp_kernel(%arg0: i32, %arg1: memref<8x128xf32, #tpu.memory_space<vmem>>, %arg2: memref<128x128xbf16, #tpu.memory_space<vmem>>, %arg3: memref<1x128xf32, #tpu.memory_space<vmem>>, %arg4: memref<128x128xbf16, #tpu.memory_space<vmem>>, %arg5: memref<1x128xf32, #tpu.memory_space<vmem>>, %arg6: memref<128x128xbf16, #tpu.memory_space<vmem>>, %arg7: memref<1x128xf32, #tpu.memory_space<vmem>>, %arg8: memref<128x128xbf16, #tpu.memory_space<vmem>>, %arg9: memref<1x128xf32, #tpu.memory_space<vmem>>, %arg10: memref<8x128xf32, #tpu.memory_space<vmem>>) attributes {dimension_semantics = [#tpu.dimension_semantics<parallel>], iteration_bounds = array<i64: 2>, scalar_prefetch = 0 : i64, scratch_operands = 0 : i64, tpu.core_type = #tpu.core_type<tc>, window_params = [{transform_indices = @transform_0, window_bounds = array<i64: 8, 128>}, {pipeline_mode = #tpu.pipeline_mode<synchronous>, transform_indices = @transform_1, window_bounds = array<i64: 128, 128>}, {pipeline_mode = #tpu.pipeline_mode<synchronous>, transform_indices = @transform_2, window_bounds = array<i64: 1, 128>}, {pipeline_mode = #tpu.pipeline_mode<synchronous>, transform_indices = @transform_3, window_bounds = array<i64: 128, 128>}, {pipeline_mode = #tpu.pipeline_mode<synchronous>, transform_indices = @transform_4, window_bounds = array<i64: 1, 128>}, {pipeline_mode = #tpu.pipeline_mode<synchronous>, transform_indices = @transform_5, window_bounds = array<i64: 128, 128>}, {pipeline_mode = #tpu.pipeline_mode<synchronous>, transform_indices = @transform_6, window_bounds = array<i64: 1, 128>}, {pipeline_mode = #tpu.pipeline_mode<synchronous>, transform_indices = @transform_7, window_bounds = array<i64: 128, 128>}, {pipeline_mode = #tpu.pipeline_mode<synchronous>, transform_indices = @transform_8, window_bounds = array<i64: 1, 128>}, {transform_indices = @transform_9, window_bounds = array<i64: 8, 128>}]} {
    %c0 = arith.constant 0 : index
    %c0_0 = arith.constant 0 : index
    %0 = vector.load %arg1[%c0, %c0_0] : memref<8x128xf32, #tpu.memory_space<vmem>>, vector<8x128xf32>
    %1 = arith.truncf %0 : vector<8x128xf32> to vector<8x128xbf16>
    %c0_1 = arith.constant 0 : index
    %c0_2 = arith.constant 0 : index
    %2 = vector.load %arg2[%c0_1, %c0_2] : memref<128x128xbf16, #tpu.memory_space<vmem>>, vector<128x128xbf16>
    %cst = arith.constant dense<0.000000e+00> : vector<8x128xf32>
    %3 = tpu.matmul %1, %2, %cst {dimension_numbers = #tpu.dot_dimension_numbers<[1], [0], [0], [1], [0, 0, 1, 1], [], []>} : vector<8x128xbf16>, vector<128x128xbf16>, vector<8x128xf32> -> vector<8x128xf32>
    %c0_3 = arith.constant 0 : index
    %c0_4 = arith.constant 0 : index
    %4 = vector.load %arg3[%c0_3, %c0_4] : memref<1x128xf32, #tpu.memory_space<vmem>>, vector<1x128xf32>
    %5 = vector.broadcast %4 : vector<1x128xf32> to vector<8x128xf32>
    %6 = arith.addf %3, %5 : vector<8x128xf32>
    %cst_5 = arith.constant 0.000000e+00 : f32
    %7 = vector.broadcast %cst_5 : f32 to vector<8x128xf32>
    %8 = arith.maximumf %6, %7 : vector<8x128xf32>
    %9 = arith.truncf %8 : vector<8x128xf32> to vector<8x128xbf16>
    %c0_6 = arith.constant 0 : index
    %c0_7 = arith.constant 0 : index
    %10 = vector.load %arg4[%c0_6, %c0_7] : memref<128x128xbf16, #tpu.memory_space<vmem>>, vector<128x128xbf16>
    %cst_8 = arith.constant dense<0.000000e+00> : vector<8x128xf32>
    %11 = tpu.matmul %9, %10, %cst_8 {dimension_numbers = #tpu.dot_dimension_numbers<[1], [0], [0], [1], [0, 0, 1, 1], [], []>} : vector<8x128xbf16>, vector<128x128xbf16>, vector<8x128xf32> -> vector<8x128xf32>
    %c0_9 = arith.constant 0 : index
    %c0_10 = arith.constant 0 : index
    %12 = vector.load %arg5[%c0_9, %c0_10] : memref<1x128xf32, #tpu.memory_space<vmem>>, vector<1x128xf32>
    %13 = vector.broadcast %12 : vector<1x128xf32> to vector<8x128xf32>
    %14 = arith.addf %11, %13 : vector<8x128xf32>
    %cst_11 = arith.constant 0.000000e+00 : f32
    %15 = vector.broadcast %cst_11 : f32 to vector<8x128xf32>
    %16 = arith.maximumf %14, %15 : vector<8x128xf32>
    %17 = arith.truncf %16 : vector<8x128xf32> to vector<8x128xbf16>
    %c0_12 = arith.constant 0 : index
    %c0_13 = arith.constant 0 : index
    %18 = vector.load %arg6[%c0_12, %c0_13] : memref<128x128xbf16, #tpu.memory_space<vmem>>, vector<128x128xbf16>
    %cst_14 = arith.constant dense<0.000000e+00> : vector<8x128xf32>
    %19 = tpu.matmul %17, %18, %cst_14 {dimension_numbers = #tpu.dot_dimension_numbers<[1], [0], [0], [1], [0, 0, 1, 1], [], []>} : vector<8x128xbf16>, vector<128x128xbf16>, vector<8x128xf32> -> vector<8x128xf32>
    %c0_15 = arith.constant 0 : index
    %c0_16 = arith.constant 0 : index
    %20 = vector.load %arg7[%c0_15, %c0_16] : memref<1x128xf32, #tpu.memory_space<vmem>>, vector<1x128xf32>
    %21 = vector.broadcast %20 : vector<1x128xf32> to vector<8x128xf32>
    %22 = arith.addf %19, %21 : vector<8x128xf32>
    %cst_17 = arith.constant 0.000000e+00 : f32
    %23 = vector.broadcast %cst_17 : f32 to vector<8x128xf32>
    %24 = arith.maximumf %22, %23 : vector<8x128xf32>
    %25 = arith.truncf %24 : vector<8x128xf32> to vector<8x128xbf16>
    %c0_18 = arith.constant 0 : index
    %c0_19 = arith.constant 0 : index
    %26 = vector.load %arg8[%c0_18, %c0_19] : memref<128x128xbf16, #tpu.memory_space<vmem>>, vector<128x128xbf16>
    %cst_20 = arith.constant dense<0.000000e+00> : vector<8x128xf32>
    %27 = tpu.matmul %25, %26, %cst_20 {dimension_numbers = #tpu.dot_dimension_numbers<[1], [0], [0], [1], [0, 0, 1, 1], [], []>} : vector<8x128xbf16>, vector<128x128xbf16>, vector<8x128xf32> -> vector<8x128xf32>
    %c0_21 = arith.constant 0 : index
    %c0_22 = arith.constant 0 : index
    %28 = vector.load %arg9[%c0_21, %c0_22] : memref<1x128xf32, #tpu.memory_space<vmem>>, vector<1x128xf32>
    %29 = vector.broadcast %28 : vector<1x128xf32> to vector<8x128xf32>
    %30 = arith.addf %27, %29 : vector<8x128xf32>
    %cst_23 = arith.constant dense<0xFF800000> : vector<8xf32>
    %31 = vector.multi_reduction <maximumf>, %30, %cst_23 [1] : vector<8x128xf32> to vector<8xf32>
    %32 = vector.shape_cast %31 : vector<8xf32> to vector<8x1xf32>
    %33 = vector.broadcast %32 : vector<8x1xf32> to vector<8x128xf32>
    %34 = arith.subf %30, %33 : vector<8x128xf32>
    %35 = math.exp %34 : vector<8x128xf32>
    %cst_24 = arith.constant dense<0.000000e+00> : vector<8xf32>
    %36 = vector.multi_reduction <add>, %35, %cst_24 [1] : vector<8x128xf32> to vector<8xf32>
    %37 = vector.shape_cast %36 : vector<8xf32> to vector<8x1xf32>
    %38 = vector.broadcast %37 : vector<8x1xf32> to vector<8x128xf32>
    %39 = arith.divf %35, %38 : vector<8x128xf32>
    %c0_25 = arith.constant 0 : index
    %c0_26 = arith.constant 0 : index
    %40 = vector.load %arg10[%c0_25, %c0_26] : memref<8x128xf32, #tpu.memory_space<vmem>>, vector<8x128xf32>
    tpu.vector_store %arg10[%c0_25, %c0_26], %39 {strides = array<i32>} : memref<8x128xf32, #tpu.memory_space<vmem>>, vector<8x128xf32>,
    return
  }
  func.func @transform_0(%arg0: i32) -> (i32, i32) {
    %c0_i32 = arith.constant 0 : i32
    %c0_i32_0 = arith.constant 0 : i32
    return %arg0, %c0_i32 : i32, i32
  }
  func.func @transform_1(%arg0: i32) -> (i32, i32) {
    %c0_i32 = arith.constant 0 : i32
    %c0_i32_0 = arith.constant 0 : i32
    %c0_i32_1 = arith.constant 0 : i32
    return %c0_i32, %c0_i32_0 : i32, i32
  }
  func.func @transform_2(%arg0: i32) -> (i32, i32) {
    %c0_i32 = arith.constant 0 : i32
    %c0_i32_0 = arith.constant 0 : i32
    %c0_i32_1 = arith.constant 0 : i32
    return %c0_i32, %c0_i32_0 : i32, i32
  }
  func.func @transform_3(%arg0: i32) -> (i32, i32) {
    %c0_i32 = arith.constant 0 : i32
    %c0_i32_0 = arith.constant 0 : i32
    %c0_i32_1 = arith.constant 0 : i32
    return %c0_i32, %c0_i32_0 : i32, i32
  }
  func.func @transform_4(%arg0: i32) -> (i32, i32) {
    %c0_i32 = arith.constant 0 : i32
    %c0_i32_0 = arith.constant 0 : i32
    %c0_i32_1 = arith.constant 0 : i32
    return %c0_i32, %c0_i32_0 : i32, i32
  }
  func.func @transform_5(%arg0: i32) -> (i32, i32) {
    %c0_i32 = arith.constant 0 : i32
    %c0_i32_0 = arith.constant 0 : i32
    %c0_i32_1 = arith.constant 0 : i32
    return %c0_i32, %c0_i32_0 : i32, i32
  }
  func.func @transform_6(%arg0: i32) -> (i32, i32) {
    %c0_i32 = arith.constant 0 : i32
    %c0_i32_0 = arith.constant 0 : i32
    %c0_i32_1 = arith.constant 0 : i32
    return %c0_i32, %c0_i32_0 : i32, i32
  }
  func.func @transform_7(%arg0: i32) -> (i32, i32) {
    %c0_i32 = arith.constant 0 : i32
    %c0_i32_0 = arith.constant 0 : i32
    %c0_i32_1 = arith.constant 0 : i32
    return %c0_i32, %c0_i32_0 : i32, i32
  }
  func.func @transform_8(%arg0: i32) -> (i32, i32) {
    %c0_i32 = arith.constant 0 : i32
    %c0_i32_0 = arith.constant 0 : i32
    %c0_i32_1 = arith.constant 0 : i32
    return %c0_i32, %c0_i32_0 : i32, i32
  }
  func.func @transform_9(%arg0: i32) -> (i32, i32) {
    %c0_i32 = arith.constant 0 : i32
    %c0_i32_0 = arith.constant 0 : i32
    return %arg0, %c0_i32 : i32, i32
  }
}

</mosaic_0001>

<bundles_post_ra>
// kernel: tpu_custom_call.1
= control target key start
LH: loop header
LB: loop body
LE: loop exit
PB: predicated region body
PF: predicated region fallthrough
CT: control target
= control target key end

     0   :  { %s1919_s0 = inlined_call_operand.hbm [shape: f32[16,128], index: 0, kind: input, shape index: {}]   ;;  %s1920_s1 = inlined_call_operand.hbm [shape: bf16[128,128], index: 1, kind: input, shape index: {}]   ;;  %s1921_s2 = inlined_call_operand.vmem [shape: f32[1,128], index: 2, kind: input, shape index: {}]   ;;  %s1922_s3 = inlined_call_operand.hbm [shape: bf16[128,128], index: 3, kind: input, shape index: {}]   ;;  %s1923_s4 = inlined_call_operand.vmem [shape: f32[1,128], index: 4, kind: input, shape index: {}]   ;;  %s1924_s5 = inlined_call_operand.hbm [shape: bf16[128,128], index: 5, kind: input, shape index: {}]   ;;  %s1925_s6 = inlined_call_operand.vmem [shape: f32[1,128], index: 6, kind: input, shape index: {}]   ;;  %s1926_s7 = inlined_call_operand.hbm [shape: bf16[128,128], index: 7, kind: input, shape index: {}]   ;;  %s1927_s8 = inlined_call_operand.vmem [shape: f32[1,128], index: 8, kind: input, shape index: {}]   ;;  %s1928_s9 = inlined_call_operand.hbm [shape: f32[16,128], index: 9, kind: output, shape index: {}]  }
   0x1   :  { %1933 = sst [smem:[#allocation16_spill]] %s1920_s1 }
   0x2   :  { %1934 = sst [smem:[#allocation17_spill]] %s1928_s9 }
   0x3   :  { %14 = vsyncpa [#allocation3], 0 }
   0x4   :  { %16 = vsyncpa [#allocation3 + $0x1], 0 }
   0x5   :  { %17 = vsyncpa [#allocation6], 0 }
   0x6   :  { %18 = vsyncpa [#allocation9], 0 }
   0x7   :  { %19 = vsyncpa [#allocation4], 0 }
   0x8   :  { %21 = vsyncpa [#allocation4 + $0x1], 0  ;;  %s1568_s30 = smov 0   ;;  %s1570_s10 = smov 0  }
   0x9   :  { %s1572_s11 = smov 0   ;;  %s1574_s12 = smov 0  }
   0xa LB: > { %s1508_s13 = smov [#allocation5]   ;;  %s1589_s15 = sadd.s32 4294967295, %s1506_s12   ;;  %s1506_s12 = sphi %s1574_s12, %s1957_s12   ;;  %s1502_s11 = sphi %s1572_s11, %s1956_s11   ;;  %s1498_s10 = sphi %s1570_s10, %s1955_s10   ;;  %s1494_s30 = sphi %s1568_s30, %s1954_s30  }
   0xb   : > { %s264_s14 = sshll.u32 %s1508_s13, 4  ;;  %p992_p0 = scmp.ge.s32.totalorder %s1506_s12, 1  ;;  %s1594_s14 = int_to_ptr.vmem [resolvable:$true] %s264_s14 }
   0xc   : > { %p1930_p1 = scmp.eq.s32.totalorder %s1589_s15, 0  ;;  %p252_p2 = scmp.lt.s32.totalorder %s1506_s12, 3 }
   0xd   : > { %s1509_s17 = smov [#allocation8]   ;;  %s1510_s20 = smov [#allocation7]  }
   0xe   : > { %p1596_p3 = pnand %p992_p0, %p252_p2  ;;  %s296_s18 = sshll.u32 %s1509_s17, 4  ;;  %s1609_s18 = int_to_ptr.vmem [resolvable:$true] %s296_s18 }
   0xf   : > { %s280_s21 = sshll.u32 %s1510_s20, 4  ;;  %s1937_s1 = sld [smem:[#allocation16_spill]]  ;;  %s1611_s21 = int_to_ptr.vmem [resolvable:$true] %s280_s21 }
  0x10   : > { %s1935_s16 = scalar_select %p1596_p3, 1, 0 }
  0x11   : > { %p1183_p5 = pneg %p1596_p3 }
  0x13   : > { %p1605_p6 = pnand %p1183_p5, %p1930_p1 }
  0x15   : > { %s1290_s24 = scalar_lea.hbm %s1937_s1, 1024  ;;  %p1621_p8 = pneg %p1605_p6 }
  0x16   : > { %p1291_p7 = scmp.ne.s32.totalorder %s1937_s1, %s1290_s24  ;;  %p1297_p11 = scmp.lt.u32.totalorder %s1290_s24, %s1937_s1 }
  0x18   : > { %p1293_p9 = pnand %p1621_p8, %p1291_p7 }
  0x1a   : > { %p1294_p10 = pneg %p1293_p9 }
  0x1c   : > { %p1299_p12 = pnand %p1297_p11, %p1294_p10 }
  0x1e   : > { %1302 = shalt.err (!%p1299_p12)
}
  0x1f   : > { %s1303_s13 = scalar_lea.vmem %s1594_s14, 1024  ;;  %p1311_p5 = scmp.lt.s32.totalorder %s1594_s14, %s1594_s14 }
  0x20   : > { %p1304_p13 = scmp.ne.s32.totalorder %s1594_s14, %s1303_s13  ;;  %p1312_p4 = scmp.lt.s32.totalorder %s1303_s13, %s1303_s13 }
  0x22   : > { %p1306_p0 = pnand %p1304_p13, %p1621_p8  ;;  %p1313_p7 = por %p1312_p4, %p1311_p5 }
  0x24   : > { %p1307_p2 = pneg %p1306_p0 }
  0x26   : > { %p1314_p9 = pnand %p1313_p7, %p1307_p2 }
  0x28   : > { %1317 = shalt.err (!%p1314_p9)
}
  0x29   : > { %s1511_s17 = smov 64   ;;  %s1512_s20 = smov 4  }
  0x2a   : > { %1186 = dma.hbm_to_vmem [thread:$0]  (!%p1605_p6), %s1937_s1, 1024, %s1594_s14, [#allocation6], %s1511_s17, %s1511_s17, %s1512_s20  }
  0x2b   : > { %s1318_s26 = scalar_lea.hbm %s1924_s5, 1024 }
  0x2c   : > { %p1319_p4 = scmp.ne.s32.totalorder %s1924_s5, %s1318_s26  ;;  %p1325_p12 = scmp.lt.u32.totalorder %s1318_s26, %s1924_s5 }
  0x2e   : > { %p1321_p10 = pnand %p1319_p4, %p1621_p8 }
  0x30   : > { %p1322_p11 = pneg %p1321_p10 }
  0x32   : > { %p1327_p13 = pnand %p1325_p12, %p1322_p11 }
  0x34   : > { %1330 = shalt.err (!%p1327_p13)
}
  0x35   : > { %s1331_s14 = scalar_lea.vmem %s1609_s18, 1024  ;;  %p1339_p7 = scmp.lt.s32.totalorder %s1609_s18, %s1609_s18 }
  0x36   : > { %p1332_p0 = scmp.ne.s32.totalorder %s1609_s18, %s1331_s14  ;;  %p1340_p9 = scmp.lt.s32.totalorder %s1331_s14, %s1331_s14 }
  0x38   : > { %p1334_p2 = pnand %p1332_p0, %p1621_p8  ;;  %p1341_p4 = por %p1340_p9, %p1339_p7 }
  0x3a   : > { %p1335_p5 = pneg %p1334_p2 }
  0x3c   : > { %p1342_p10 = pnand %p1341_p4, %p1335_p5 }
  0x3e   : > { %1345 = shalt.err (!%p1342_p10)
}
  0x3f   : > { %1192 = dma.hbm_to_vmem [thread:$0]  (!%p1605_p6), %s1924_s5, 1024, %s1609_s18, [#allocation9], %s1511_s17, %s1511_s17, %s1512_s20  }
  0x40   : > { %s1346_s25 = scalar_lea.hbm %s1922_s3, 1024 }
  0x41   : > { %p1347_p11 = scmp.ne.s32.totalorder %s1922_s3, %s1346_s25  ;;  %p1353_p0 = scmp.lt.u32.totalorder %s1346_s25, %s1922_s3 }
  0x43   : > { %p1349_p12 = pnand %p1347_p11, %p1621_p8 }
  0x45   : > { %p1350_p13 = pneg %p1349_p12 }
  0x47   : > { %p1355_p2 = pnand %p1353_p0, %p1350_p13 }
  0x49   : > { %1358 = shalt.err (!%p1355_p2)
}
  0x4a   : > { %s1359_s18 = scalar_lea.vmem %s1611_s21, 1024  ;;  %p1367_p4 = scmp.lt.s32.totalorder %s1611_s21, %s1611_s21 }
  0x4b   : > { %p1360_p5 = scmp.ne.s32.totalorder %s1611_s21, %s1359_s18  ;;  %p1368_p10 = scmp.lt.s32.totalorder %s1359_s18, %s1359_s18 }
  0x4d   : > { %p1362_p7 = pnand %p1360_p5, %p1621_p8  ;;  %p1369_p11 = por %p1368_p10, %p1367_p4 }
  0x4f   : > { %p1363_p9 = pneg %p1362_p7 }
  0x51   : > { %p1370_p12 = pnand %p1369_p11, %p1363_p9 }
  0x53   : > { %1373 = shalt.err (!%p1370_p12)
}
  0x54   : > { %1189 = dma.hbm_to_vmem [thread:$0]  (!%p1605_p6), %s1922_s3, 1024, %s1611_s21, [#allocation6], %s1511_s17, %s1511_s17, %s1512_s20  }
  0x55   : > { %s1513_s22 = smov [#allocation10]   ;;  %s1374_s26 = scalar_lea.hbm %s1926_s7, 1024 }
  0x56   : > { %s312_s23 = sshll.u32 %s1513_s22, 4  ;;  %p1375_p13 = scmp.ne.s32.totalorder %s1926_s7, %s1374_s26  ;;  %s313_s23 = int_to_ptr.vmem [resolvable:$true] %s312_s23 }
  0x57   : > { %p1381_p5 = scmp.lt.u32.totalorder %s1374_s26, %s1926_s7 }
  0x58   : > { %p1377_p0 = pnand %p1375_p13, %p1621_p8 }
  0x5a   : > { %p1378_p2 = pneg %p1377_p0 }
  0x5c   : > { %p1383_p7 = pnand %p1381_p5, %p1378_p2 }
  0x5e   : > { %1386 = shalt.err (!%p1383_p7)
}
  0x5f   : > { %s1387_s21 = scalar_lea.vmem %s313_s23, 1024  ;;  %p1395_p11 = scmp.lt.s32.totalorder %s313_s23, %s313_s23 }
  0x60   : > { %p1388_p9 = scmp.ne.s32.totalorder %s313_s23, %s1387_s21  ;;  %p1396_p12 = scmp.lt.s32.totalorder %s1387_s21, %s1387_s21 }
  0x62   : > { %p1390_p4 = pnand %p1388_p9, %p1621_p8  ;;  %p1397_p1 = por %p1396_p12, %p1395_p11 }
  0x64   : > { %p1391_p10 = pneg %p1390_p4 }
  0x66   : > { %p1398_p3 = pnand %p1397_p1, %p1391_p10 }
  0x68   : > { %1401 = shalt.err (!%p1398_p3)
}
  0x69   : > { %1195 = dma.hbm_to_vmem [thread:$0]  (!%p1605_p6), %s1926_s7, 1024, %s313_s23, [#allocation9], %s1511_s17, %s1511_s17, %s1512_s20  }
  0x6a   : > { %s991_s19 = sadd.s32 4294967294, %s1506_s12   ;;  %s1720_s27 = sadd.s32 1, %s1506_s12  }
  0x6b   : > { %s31_s22 = ssub.s32 %s1506_s12, %s1720_s27  ;;  %s34_s24 = sadd.s32 1, %s1502_s11 }
  0x6c   : > { %p32_p1 = scmp.eq.s32.totalorder %s31_s22, 0  ;;  %p41_p3 = scmp.ne.s32.totalorder %s1502_s11, %s1498_s10 }
  0x6d   : > { %p42_p8 = scmp.eq.s32.totalorder %s1506_s12, 0  ;;  %p47_p13 = scmp.ne.s32.totalorder %s1498_s10, %s1494_s30 }
  0x6e   : > { %s1731_s25 = scalar_select %p32_p1, %s1502_s11, %s34_s24  }
  0x6f   : > { %p1733_p0 = por %p42_p8, %p41_p3  ;;  %p1940_p2 = scmp.eq.s32.totalorder %s1589_s15, 0 }
  0x70   : > { %p239_p5 = scmp.eq.s32.totalorder %s1589_s15, 1  ;;  %p245_p7 = scmp.eq.s32.totalorder %s991_s19, 1 }
  0x71   : > { %p1739_p6 = por %p1940_p2, %p47_p13  ;;  %p1208_p9 = scmp.lt.s32.totalorder %s1506_s12, 2 }
  0x72   : > { %s329_s20 = sand.u32 1, %s1502_s11   ;;  %p1746_p4 = por %p239_p5, %p41_p3 }
  0x73   : > { %p1750_p10 = por %p245_p7, %p47_p13  ;;  %s998_s29 = sshll.u32 %s329_s20, 3 }
  0x74   : > { %s1942_s23 = scalar_select %p1746_p4, 1, 0 }
  0x75   : > { %s1943_s28 = scalar_select %p1750_p10, 1, 0 }
  0x76   : > { %s999_s13 = sshll.u32 %s1506_s12, 7  ;;  %s333_s9 = scalar_lea.vmem [#allocation2], %s998_s29 }
  0x77   : > { %s1758_s14 = scalar_lea.hbm %s1919_s0, %s999_s13  ;;  %s340_s19 = sshll.u32 %s333_s9, 4  ;;  %s1760_s19 = int_to_ptr.vmem [resolvable:$true] %s340_s19 }
  0x78   : > { %p1764_p11 = pnand %p1208_p9, %p1733_p0  ;;  %s330_s24 = scalar_lea.sflag [#allocation3], %s329_s20 }
  0x79   : > { %s1402_s1 = scalar_lea.hbm %s1758_s14, 128  ;;  %s1407_s18 = scalar_lea.hbm %s1919_s0, 256 }
  0x7a   : > { %p1403_p12 = scmp.ne.s32.totalorder %s1758_s14, %s1402_s1  ;;  %p1404_p1 = pneg %p1764_p11 }
  0x7b   : > { %p1408_p13 = scmp.lt.u32.totalorder %s1758_s14, %s1919_s0  ;;  %p1409_p0 = scmp.lt.u32.totalorder %s1407_s18, %s1402_s1 }
  0x7c   : > { %p1405_p3 = pnand %p1404_p1, %p1403_p12  ;;  %p1411_p5 = scmp.lt.u32.totalorder %s1402_s1, %s1758_s14 }
  0x7d   : > { %p1410_p2 = por %p1409_p0, %p1408_p13 }
  0x7e   : > { %p1406_p8 = pneg %p1405_p3 }
  0x7f   : > { %p1412_p7 = por %p1411_p5, %p1410_p2 }
  0x81   : > { %p1413_p9 = pnand %p1412_p7, %p1406_p8 }
  0x83   : > { %1416 = shalt.err (!%p1413_p9)
}
  0x84   : > { %s1417_s20 = scalar_lea.vmem %s1760_s19, 128  ;;  %s1514_s9 = smov [#allocation2]  }
  0x85   : > { %p1418_p12 = scmp.ne.s32.totalorder %s1760_s19, %s1417_s20  ;;  %s1422_s29 = sshll.u32 %s1514_s9, 4  ;;  %s1423_s29 = int_to_ptr.vmem [resolvable:$false] %s1422_s29 }
  0x86   : > { %s1424_s13 = scalar_lea.vmem %s1423_s29, 256  ;;  %p1425_p4 = scmp.lt.s32.totalorder %s1760_s19, %s1423_s29 }
  0x87   : > { %p1420_p3 = pnand %p1418_p12, %p1404_p1  ;;  %p1426_p13 = scmp.lt.s32.totalorder %s1424_s13, %s1417_s20 }
  0x89   : > { %p1421_p10 = pneg %p1420_p3  ;;  %p1427_p0 = por %p1426_p13, %p1425_p4 }
  0x8b   : > { %p1428_p2 = pnand %p1427_p0, %p1421_p10 }
  0x8d   : > { %1431 = shalt.err (!%p1428_p2)
}
  0x8e   : > { %1199 = dma.hbm_to_vmem [thread:$0]  (!%p1764_p11), %s1758_s14, 128, %s1760_s19, %s330_s24  }
  0x8f   : > { %p1945_p8 = scmp.ne.s32.totalorder %s1935_s16, 0 }
  0x90   : > { %s1796_s1 = sand.u32 (!%p1945_p8), 1, %s1498_s10  }
  0x91   : > { %349 = sbr.rel (%p1945_p8) target bundleno = 1387 (0x56b), region = 56  ;;  %s1001_s18 = sshll.u32 (!%p1945_p8), %s1796_s1, 3 }
  0x92   : > { %s352_s26 = scalar_lea.sflag (!%p1945_p8), [#allocation3], %s1796_s1  ;;  %s1802_s21 = scalar_lea.vmem (!%p1945_p8), [#allocation2], %s1001_s18 }
  0x98   : > { %1477 = dma.done.wait (%p1739_p6), %s352_s26, 128  }
  0x99   : > { %1479 = vsyncadd (%p1739_p6), %s352_s26, 4294967168  ;;  %p1946_p4 = scmp.eq.s32.totalorder %s1589_s15, 0 }
  0x9b   : > { %1481 = dma.done.wait (%p1946_p4), [#allocation6], 2048   ;;  %p1947_p10 = pmov %p1946_p4 }
  0x9c   : > { %p1948_p11 = pmov %p1946_p4 }
  0x9d   : > { %1483 = vsyncadd (%p1947_p10), [#allocation6], 4294965248 }
  0x9e   : > { %1485 = dma.done.wait (%p1948_p11), [#allocation9], 2048   ;;  %p1949_p1 = pmov %p1946_p4 }
  0x9f   : > { %v1515_v0 = vmov 0.0   ;;  %vm1516_vm0 = vmmov 0   ;;  %v1254_v1 = vld [vmem:[#allocation5] sm:$0xff]   ;;  %v1255_v2 = vld [vmem:[#allocation5 + $0x8] sm:$0xff]   ;;  %v1256_v3 = vld [vmem:[#allocation5 + $0x10] sm:$0xff]   ;;  %s1044_s29 = sshll.u32 %s1589_s15, 7 }
  0xa0   : > { %1487 = vsyncadd (%p1949_p1), [#allocation9], 4294965248  ;;  %1083 = vmatprep.subr.bf16.mxu0 %v1515_v0  ;;  %1099 = vmatprep.mubr.msk.bf16.mxu0 %vm1516_vm0, %v1515_v0  ;;  %v1262_v4 = vld [vmem:[#allocation7] sm:$0xff]   ;;  %v1257_v5 = vld [vmem:[#allocation5 + $0x18] sm:$0xff]   ;;  %s405_s13 = scalar_lea.vmem [#allocation11], %s1001_s18  ;;  %s1950_s17 = sld [smem:[#allocation17_spill]] }
  0xa1   : > { %1103 = vmatprep.subr.bf16.mxu1 %v1515_v0  ;;  %1119 = vmatprep.mubr.msk.bf16.mxu1 %vm1516_vm0, %v1515_v0  ;;  %v1263_v6 = vld [vmem:[#allocation7 + $0x8] sm:$0xff]   ;;  %v1258_v7 = vld [vmem:[#allocation5 + $0x20] sm:$0xff]   ;;  %v1264_v8 = vld [vmem:[#allocation7 + $0x10] sm:$0xff]   ;;  %s883_s26 = sshll.u32 %s405_s13, 4  ;;  %s870_s19 = scalar_lea.sflag [#allocation4], %s1796_s1  ;;  %s1877_s26 = int_to_ptr.vmem [resolvable:$true] %s883_s26 }
  0xa2   : > { %1084 = vmatpush3.bf16.msra.mxu0 %v1254_v1  ;;  %1104 = vmatpush3.bf16.msra.mxu1 %v1262_v4  ;;  %v1259_v9 = vld [vmem:[#allocation5 + $0x28] sm:$0xff]   ;;  %v1265_v10 = vld [vmem:[#allocation7 + $0x18] sm:$0xff]   ;;  %v1260_v11 = vld [vmem:[#allocation5 + $0x30] sm:$0xff]   ;;  %s1432_s22 = scalar_lea.vmem %s1877_s26, 128  ;;  %p1951_p5 = scmp.ne.s32.totalorder %s1942_s23, 0 }
  0xa3   : > { %1085 = vmatprep.subr.bf16.mxu0 %v1515_v0  ;;  %1105 = vmatprep.subr.bf16.mxu1 %v1515_v0  ;;  %v1266_v12 = vld [vmem:[#allocation7 + $0x20] sm:$0xff]   ;;  %v1261_v13 = vld [vmem:[#allocation5 + $0x38] sm:$0xff]   ;;  %v1267_v15 = vld [vmem:[#allocation7 + $0x28] sm:$0xff]   ;;  %p1433_p6 = scmp.ne.s32.totalorder %s1877_s26, %s1432_s22  ;;  %s1517_s15 = smov [#allocation11]  }
  0xa4   : > { %v407_v14 = vld [vmem:[%s1802_s21] sm:$0xff]  ;;  %v1270_v19 = vld [vmem:[#allocation8] sm:$0xff]   ;;  %v1271_v20 = vld [vmem:[#allocation8 + $0x8] sm:$0xff]   ;;  %s1436_s18 = sshll.u32 %s1517_s15, 4  ;;  %s1437_s18 = int_to_ptr.vmem [resolvable:$false] %s1436_s18 }
  0xa5   : > { %v408_v16 = vpack.c.bf16 %v407_v14, %v407_v14  ;;  %v1268_v17 = vld [vmem:[#allocation7 + $0x30] sm:$0xff]   ;;  %v1269_v18 = vld [vmem:[#allocation7 + $0x38] sm:$0xff]   ;;  %v1274_v23 = vld [vmem:[#allocation8 + $0x20] sm:$0xff]   ;;  %p1434_p7 = pnand %p1433_p6, %p1951_p5  ;;  %s1438_s24 = scalar_lea.vmem %s1437_s18, 256 }
  0xa6   : > { %1086 = vmatpush3.bf16.msra.mxu0 %v1255_v2  ;;  %1106 = vmatpush3.bf16.msra.mxu1 %v1263_v6  ;;  %v1272_v21 = vld [vmem:[#allocation8 + $0x10] sm:$0xff]   ;;  %v1273_v22 = vld [vmem:[#allocation8 + $0x18] sm:$0xff]   ;;  %v1275_v24 = vld [vmem:[#allocation8 + $0x28] sm:$0xff]   ;;  %s1875_s14 = scalar_lea.hbm %s1950_s17, %s1044_s29  ;;  %p1439_p12 = scmp.lt.s32.totalorder %s1877_s26, %s1437_s18 }
  0xa7   : > { %1087 = vmatprep.subr.bf16.mxu0 %v1515_v0  ;;  %1107 = vmatprep.subr.bf16.mxu1 %v1515_v0  ;;  %v1007_v25 = vld [vmem:[%s1921_s2] ss:$0 sm:$0xff]  ;;  %v1277_v34 = vld [vmem:[#allocation8 + $0x38] sm:$0xff]   ;;  %v1278_v35 = vld [vmem:[#allocation10] sm:$0xff]   ;;  %p1435_p9 = pneg %p1434_p7  ;;  %p1440_p3 = scmp.lt.s32.totalorder %s1438_s24, %s1432_s22 }
  0xa8   : > { %v1276_v33 = vld [vmem:[#allocation8 + $0x30] sm:$0xff]   ;;  %v1279_v36 = vld [vmem:[#allocation10 + $0x8] sm:$0xff]   ;;  %v1281_v38 = vld [vmem:[#allocation10 + $0x18] sm:$0xff]  }
  0xa9   : > { %v1280_v37 = vld [vmem:[#allocation10 + $0x10] sm:$0xff]   ;;  %v1282_v39 = vld [vmem:[#allocation10 + $0x20] sm:$0xff]   ;;  %v1283_v40 = vld [vmem:[#allocation10 + $0x28] sm:$0xff]   ;;  %p1441_p13 = por %p1440_p3, %p1439_p12 }
  0xaa   : > { %1088 = vmatpush3.bf16.msra.mxu0 %v1256_v3  ;;  %1108 = vmatpush3.bf16.msra.mxu1 %v1264_v8  ;;  %v1016_v41 = vld [vmem:[%s1923_s4] ss:$0 sm:$0xff]  ;;  %v1285_v50 = vld [vmem:[#allocation10 + $0x38] sm:$0xff]  }
  0xab   : > { %1089 = vmatprep.subr.bf16.mxu0 %v1515_v0  ;;  %1109 = vmatprep.subr.bf16.mxu1 %v1515_v0  ;;  %v1284_v49 = vld [vmem:[#allocation10 + $0x30] sm:$0xff]   ;;  %p1442_p0 = pnand %p1441_p13, %p1435_p9 }
  0xac   : > { %v1025_v51 = vld [vmem:[%s1925_s6] ss:$0 sm:$0xff] }
  0xad   : > { %v1034_v59 = vld [vmem:[%s1927_s8] ss:$0 sm:$0xff] }
  0xae   : > { %1090 = vmatpush3.bf16.msra.mxu0 %v1257_v5  ;;  %1110 = vmatpush3.bf16.msra.mxu1 %v1265_v10 }
  0xaf   : > { %1091 = vmatprep.subr.bf16.mxu0 %v1515_v0  ;;  %1111 = vmatprep.subr.bf16.mxu1 %v1515_v0 }
  0xb2   : > { %1092 = vmatpush3.bf16.msra.mxu0 %v1258_v7  ;;  %1112 = vmatpush3.bf16.msra.mxu1 %v1266_v12 }
  0xb3   : > { %1093 = vmatprep.subr.bf16.mxu0 %v1515_v0  ;;  %1113 = vmatprep.subr.bf16.mxu1 %v1515_v0 }
  0xb6   : > { %1094 = vmatpush3.bf16.msra.mxu0 %v1259_v9  ;;  %1114 = vmatpush3.bf16.msra.mxu1 %v1267_v15 }
  0xb7   : > { %1095 = vmatprep.subr.bf16.mxu0 %v1515_v0  ;;  %1115 = vmatprep.subr.bf16.mxu1 %v1515_v0 }
  0xba   : > { %1096 = vmatpush3.bf16.msra.mxu0 %v1260_v11  ;;  %1116 = vmatpush3.bf16.msra.mxu1 %v1268_v17 }
  0xbb   : > { %1097 = vmatprep.subr.bf16.mxu0 %v1515_v0  ;;  %1117 = vmatprep.subr.bf16.mxu1 %v1515_v0 }
  0xbe   : > { %1098 = vmatpush3.bf16.msra.mxu0 %v1261_v13  ;;  %1118 = vmatpush3.bf16.msra.mxu1 %v1269_v18 }
  0xbf   : > { %1123 = vmatprep.subr.bf16.mxu0 %v1515_v0  ;;  %1143 = vmatprep.subr.bf16.mxu1 %v1515_v0 }
  0xc1   : > { %1100 = vmatmul.mubr.bf16.vlgmr.msra.gmra.mrb[0].mxu0 %v408_v16 }
  0xc2   : > { %1139 = vmatprep.mubr.msk.bf16.mxu0 %vm1516_vm0, %v1515_v0  ;;  %1124 = vmatpush3.bf16.msra.mxu0 %v1270_v19 }
  0xc3   : > { %1125 = vmatprep.subr.bf16.mxu0 %v1515_v0 }
  0xc6   : > { %1126 = vmatpush3.bf16.msra.mxu0 %v1271_v20 }
  0xc7   : > { %1127 = vmatprep.subr.bf16.mxu0 %v1515_v0 }
  0xca   : > { %1128 = vmatpush3.bf16.msra.mxu0 %v1272_v21 }
  0xcb   : > { %1129 = vmatprep.subr.bf16.mxu0 %v1515_v0 }
  0xce   : > { %1130 = vmatpush3.bf16.msra.mxu0 %v1273_v22 }
  0xcf   : > { %1131 = vmatprep.subr.bf16.mxu0 %v1515_v0 }
  0xd2   : > { %1132 = vmatpush3.bf16.msra.mxu0 %v1274_v23 }
  0xd3   : > { %1133 = vmatprep.subr.bf16.mxu0 %v1515_v0 }
  0xd6   : > { %1134 = vmatpush3.bf16.msra.mxu0 %v1275_v24 }
  0xd7   : > { %1135 = vmatprep.subr.bf16.mxu0 %v1515_v0 }
  0xda   : > { %1136 = vmatpush3.bf16.msra.mxu0 %v1276_v33 }
  0xdb   : > { %1137 = vmatprep.subr.bf16.mxu0 %v1515_v0 }
  0xde   : > { %1138 = vmatpush3.bf16.msra.mxu0 %v1277_v34 }
 0x194   : > { %v514_v26 = vpop.f32.mrb[0].mxu0 }
 0x195   : > { %v515_v27 = vadd.f32 %v1007_v25, %v514_v26  ;;  %v1101_v28 = vpop.f32.mrb[1].mxu0 }
 0x196   : > { %v517_v29 = vpop.f32.mrb[2].mxu0 }
 0x197   : > { %v520_v30 = vmax.f32 %v515_v27, 0.0  ;;  %v1102_v31 = vpop.f32.mrb[3].mxu0 }
 0x199   : > { %v521_v32 = vpack.c.bf16 %v520_v30, %v520_v30 }
 0x19b   : > { %1120 = vmatmul.mubr.bf16.vlgmr.msra.gmra.mrb[0].mxu1 %v521_v32 }
 0x19c   : > { %1159 = vmatprep.mubr.msk.bf16.mxu1 %vm1516_vm0, %v1515_v0  ;;  %1144 = vmatpush3.bf16.msra.mxu1 %v1278_v35 }
 0x19d   : > { %1145 = vmatprep.subr.bf16.mxu1 %v1515_v0 }
 0x1a0   : > { %1146 = vmatpush3.bf16.msra.mxu1 %v1279_v36 }
 0x1a1   : > { %1147 = vmatprep.subr.bf16.mxu1 %v1515_v0 }
 0x1a4   : > { %1148 = vmatpush3.bf16.msra.mxu1 %v1280_v37 }
 0x1a5   : > { %1149 = vmatprep.subr.bf16.mxu1 %v1515_v0 }
 0x1a8   : > { %1150 = vmatpush3.bf16.msra.mxu1 %v1281_v38 }
 0x1a9   : > { %1151 = vmatprep.subr.bf16.mxu1 %v1515_v0 }
 0x1ac   : > { %1152 = vmatpush3.bf16.msra.mxu1 %v1282_v39 }
 0x1ad   : > { %1153 = vmatprep.subr.bf16.mxu1 %v1515_v0 }
 0x1b0   : > { %1154 = vmatpush3.bf16.msra.mxu1 %v1283_v40 }
 0x1b1   : > { %1155 = vmatprep.subr.bf16.mxu1 %v1515_v0 }
 0x1b4   : > { %1156 = vmatpush3.bf16.msra.mxu1 %v1284_v49 }
 0x1b5   : > { %1157 = vmatprep.subr.bf16.mxu1 %v1515_v0 }
 0x1b8   : > { %1158 = vmatpush3.bf16.msra.mxu1 %v1285_v50 }
 0x26e   : > { %v627_v42 = vpop.f32.mrb[0].mxu1 }
 0x26f   : > { %v628_v43 = vadd.f32 %v1016_v41, %v627_v42  ;;  %v1121_v44 = vpop.f32.mrb[1].mxu1 }
 0x270   : > { %v630_v45 = vpop.f32.mrb[2].mxu1 }
 0x271   : > { %v633_v46 = vmax.f32 %v628_v43, 0.0  ;;  %v1122_v47 = vpop.f32.mrb[3].mxu1 }
 0x273   : > { %v634_v48 = vpack.c.bf16 %v633_v46, %v633_v46 }
 0x275   : > { %1140 = vmatmul.mubr.bf16.vlgmr.msra.gmra.mrb[4].mxu0 %v634_v48 }
 0x348   : > { %v740_v52 = vpop.f32.mrb[4].mxu0 }
 0x349   : > { %v741_v53 = vadd.f32 %v1025_v51, %v740_v52  ;;  %v1141_v54 = vpop.f32.mrb[5].mxu0 }
 0x34a   : > { %v743_v55 = vpop.f32.mrb[6].mxu0 }
 0x34b   : > { %v746_v56 = vmax.f32 %v741_v53, 0.0  ;;  %v1142_v57 = vpop.f32.mrb[7].mxu0 }
 0x34d   : > { %v747_v58 = vpack.c.bf16 %v746_v56, %v746_v56 }
 0x34f   : > { %1160 = vmatmul.mubr.bf16.vlgmr.msra.gmra.mrb[4].mxu1 %v747_v58 }
 0x422   : > { %v853_v60 = vpop.f32.mrb[4].mxu1 }
 0x423   : > { %v854_v61 = vadd.f32 %v1034_v59, %v853_v60  ;;  %v1161_v62 = vpop.f32.mrb[5].mxu1 }
 0x424   : > { %v856_v63 = vpop.f32.mrb[6].mxu1 }
 0x425   : > { %859 = vmax.xlane.f32.xlu0 %v854_v61  ;;  %v1162_v0 = vpop.f32.mrb[7].mxu1 }
 0x4b2   : > { %v860_v1 = vpop.xlane.xlu0 %859 }
 0x4b3   : > { %v861_v2 = vsub.f32 %v854_v61, %v860_v1 }
 0x4b5   : > { %v862_v3 = vmul.f32 1.442695, %v861_v2 }
 0x4b7   : > { %1286 = vpow2.f32 %v862_v3 }
 0x4c1   : > { %v1287_v4 = vpop.eup %1286 }
 0x4c2   : > { %864 = vadd.xlane.f32.xlu0 %v1287_v4 }
 0x54f   : > { %v865_v5 = vpop.xlane.xlu0 %864 }
 0x550   : > { %1288 = vrcp.f32 %v865_v5 }
 0x55a   : > { %v1289_v6 = vpop.eup %1288 }
 0x55b   : > { %v867_v7 = vmul.f32 %v1289_v6, %v1287_v4 }
 0x55d   : > { %868 = vst [vmem:[%s405_s13] sm:$0xff] %v867_v7 }
 0x55e   : > { %1445 = shalt.err (!%p1442_p0)
}
 0x55f   : > { %s1446_s1 = scalar_lea.hbm %s1875_s14, 128  ;;  %s1450_s29 = scalar_lea.hbm %s1950_s17, 256 }
 0x560   : > { %p1447_p2 = scmp.ne.s32.totalorder %s1875_s14, %s1446_s1  ;;  %p1451_p10 = scmp.lt.u32.totalorder %s1875_s14, %s1950_s17 }
 0x561   : > { %p1452_p11 = scmp.lt.u32.totalorder %s1450_s29, %s1446_s1  ;;  %p1454_p6 = scmp.lt.u32.totalorder %s1446_s1, %s1875_s14 }
 0x562   : > { %p1448_p8 = pnand %p1447_p2, %p1951_p5 }
 0x563   : > { %p1453_p1 = por %p1452_p11, %p1451_p10 }
 0x564   : > { %p1449_p4 = pneg %p1448_p8 }
 0x565   : > { %p1455_p7 = por %p1454_p6, %p1453_p1 }
 0x567   : > { %p1456_p9 = pnand %p1455_p7, %p1449_p4 }
 0x569   : > { %1459 = shalt.err (!%p1456_p9)
}
 0x56a   : > { %1181 = dma.vmem_to_hbm [thread:$0]  (%p1951_p5), %s1877_s26, 128, %s1875_s14, %s870_s19  }
 0x56b PF: > { %s895_s16 = sand.u32 1, %s1494_s30   ;;  %p1952_p12 = scmp.ne.s32.totalorder %s1943_s28, 0 }
 0x56c   : > { %p1953_p3 = scmp.ge.s32.totalorder %s1506_s12, 2  ;;  %s896_s22 = scalar_lea.sflag [#allocation4], %s895_s16 }
 0x56e   : > { %p1201_p13 = pnand %p1953_p3, %p1952_p12 }
 0x570   : > { %1489 = dma.done.wait (!%p1201_p13), %s896_s22, 128  }
 0x571   : > { %1491 = vsyncadd (!%p1201_p13), %s896_s22, 4294967168  ;;  %p24_p0 = scmp.ge.s32.totalorder %s1720_s27, 4   ;;  %s1954_s30 = smov %s1498_s10 }
 0x572   : > { %s1955_s10 = smov %s1502_s11  ;;  %s1956_s11 = smov %s1731_s25 }
 0x573   : > { %s1957_s12 = smov %s1720_s27  ;;  %26 = sbr.rel (!%p24_p0) target bundleno = 10 (0xa), region = 117 }
 0x57a   :  { %901 = vsyncpa [#allocation3], 1 }
 0x57b   :  { %903 = vsyncpa [#allocation3 + $0x1], 1 }
 0x57c   :  { %904 = vsyncpa [#allocation6], 1 }
 0x57d   :  { %905 = vsyncpa [#allocation9], 1 }
 0x57e   :  { %906 = vsyncpa [#allocation4], 1 }
 0x57f   :  { %908 = vsyncpa [#allocation4 + $0x1], 1 }

</bundles_post_ra>
